<compile_context>
chip_gen: v6e
topology: v6e:2x2x1
jax: 0.10.0
libtpu: 0.0.40
codegen_flags: <defaults>
</compile_context>

<pallas_src>
from functools import partial

import jax
import jax.numpy as jnp
from jax.experimental import pallas as pl
from jax.experimental.pallas import tpu as pltpu


def _quantize_kernel(inv_scale_ref, zp_ref, x_ref, q_ref, *, add_zp):
    # inv_scale / zero_point live in SMEM as scalars.
    x = x_ref[...].astype(jnp.float32)
    # round-half-to-even matches torch's nearbyint rounding.
    q = jnp.round(x * inv_scale_ref[0])
    if add_zp:
        q = q + zp_ref[0].astype(jnp.float32)
    # Clip before the int8 cast to avoid wraparound.
    q = jnp.clip(q, -128.0, 127.0)
    q_ref[...] = q.astype(jnp.int8)


def _choose_layout(total):
    """Pick the widest lane dim that divides the element count so the
    wrapper-side ravel/reshape is a pure view (no HBM copy)."""
    for lanes in (1024, 512, 256, 128):
        if total % lanes == 0:
            return lanes, 0
    # Fallback for ragged element counts: pad flat array to a multiple of 128.
    # TODO(synk): rare path; costs an extra HBM pass (pad + output slice).
    # Could be removed with an in-kernel masked tail store if it ever matters.
    lanes = 128
    pad = (-total) % lanes
    return lanes, pad


def _choose_tm(rows, lanes, target_elems):
    """Row-block size: multiple of 32 sublanes, >=2 blocks (even count
    preferred) when rows allow, capped at ~target_elems per block."""
    if rows < 64:
        # Not enough rows for two >=32-row blocks: one full-slab block
        # (block_shape == full array dims is always legal).
        return rows
    max_tm = max(32, ((target_elems // lanes) // 32) * 32)
    # At least 2 blocks so the "parallel" axis can shard across v7x's 2 TCs.
    tm = max(32, min(max_tm, (rows // 64) * 32))
    # Prefer an even block count (load balance across 2 TensorCores); scan a
    # few smaller multiples of 32.
    for cand in range(tm, max(0, tm - 4 * 32), -32):
        if (-(-rows // cand)) % 2 == 0:
            return cand
    return tm


class Quantizer:
    """JAX/Pallas port of the PyTorch Quantizer module (per-tensor qint8)."""

    # ~2 MiB f32 input block / 0.5 MiB int8 output block per buffer:
    # amortizes per-step overhead, near HBM roofline, and the double-buffered
    # working set (~5 MiB) fits every generation's default scoped VMEM.
    _TARGET_BLOCK_ELEMS = 512 * 1024

    def __init__(self, scale=1.0, zero_point=0):
        # Non-trainable buffers in the original module.
        self.scale = jnp.asarray(scale, dtype=jnp.float32).reshape((1,))
        self.zero_point = jnp.asarray(zero_point, dtype=jnp.int32).reshape((1,))
        # Specialize the kernel trace when zero_point is statically zero.
        self._add_zp = not (
            isinstance(zero_point, (int, float)) and zero_point == 0
        )
        self.Qp, self.Qn = (127, -128)

    def __call__(self, x):
        orig_shape = x.shape
        total = 1
        for d in orig_shape:
            total *= d

        lanes, pad = _choose_layout(total)

        # Keep the input's native dtype; the kernel casts tiles to f32
        # in-register (matches x.float() semantics, halves read traffic for
        # sub-32-bit inputs).
        x_flat = jnp.ravel(x)
        if pad > 0:
            x_flat = jnp.pad(x_flat, (0, pad))
        rows = (total + pad) // lanes
        x2d = x_flat.reshape(rows, lanes)

        tm = _choose_tm(rows, lanes, self._TARGET_BLOCK_ELEMS)
        grid = (pl.cdiv(rows, tm),)

        # Scalar reciprocal computed once outside the kernel.
        inv_scale = (1.0 / self.scale).astype(jnp.float32)

        q2d = pl.pallas_call(
            partial(_quantize_kernel, add_zp=self._add_zp),
            out_shape=jax.ShapeDtypeStruct((rows, lanes), jnp.int8),
            grid_spec=pltpu.PrefetchScalarGridSpec(
                num_scalar_prefetch=0,
                grid=grid,
                in_specs=[
                    pl.BlockSpec(memory_space=pltpu.MemorySpace.SMEM),  # 1/scale
                    pl.BlockSpec(memory_space=pltpu.MemorySpace.SMEM),  # zero_point
                    pl.BlockSpec((tm, lanes), lambda i: (i, 0)),        # x tile
                ],
                out_specs=pl.BlockSpec((tm, lanes), lambda i: (i, 0)),
            ),
            compiler_params=pltpu.CompilerParams(
                dimension_semantics=("parallel",)
            ),
        )(inv_scale, self.zero_point, x2d)

        if pad > 0:
            q_int8 = jnp.ravel(q2d)[:total].reshape(orig_shape)
        else:
            q_int8 = q2d.reshape(orig_shape)

        # Return the quantized-tensor triple (int_repr, scale, zero_point).
        return q_int8, self.scale[0], self.zero_point[0]


if __name__ == "__main__":
    key = jax.random.PRNGKey(0)
    # Small NCHW input consistent with typical usage of the module.
    x = jax.random.normal(key, (2, 4, 16, 16), dtype=jnp.float32) * 3.0

    # Case 1: default zero_point=0 (specialized trace drops the zp add).
    quantizer = Quantizer(scale=0.05, zero_point=0)
    q_int8, scale, zero_point = quantizer(x)
    q_int8 = jax.block_until_ready(q_int8)

    inv_scale = 1.0 / scale
    ref = jnp.clip(jnp.round(x * inv_scale) + zero_point, -128, 127).astype(jnp.int8)
    assert q_int8.shape == x.shape and q_int8.dtype == jnp.int8
    assert bool(jnp.all(q_int8 == ref))

    # Case 2: non-zero zero_point exercises the zp-add path.
    quantizer2 = Quantizer(scale=0.1, zero_point=3)
    q2, s2, zp2 = quantizer2(x)
    q2 = jax.block_until_ready(q2)
    ref2 = jnp.clip(jnp.round(x * (1.0 / s2)) + zp2, -128, 127).astype(jnp.int8)
    assert bool(jnp.all(q2 == ref2))

    print("KERNEL_OK")
</pallas_src>

<mosaic_0001>
module attributes {stable_mosaic.version = 11 : i64} {
  func.func @_quantize_kernel(%arg0: i32, %arg1: memref<1xf32, #tpu.memory_space<smem>>, %arg2: memref<1xi32, #tpu.memory_space<smem>>, %arg3: memref<2x1024xf32, #tpu.memory_space<vmem>>, %arg4: memref<2x1024xi8, #tpu.memory_space<vmem>>) attributes {dimension_semantics = [#tpu.dimension_semantics<parallel>], iteration_bounds = array<i64: 1>, scalar_prefetch = 0 : i64, scratch_operands = 0 : i64, tpu.core_type = #tpu.core_type<tc>, window_params = [{transform_indices = @transform_0, window_bounds = array<i64: 1>}, {transform_indices = @transform_1, window_bounds = array<i64: 1>}, {transform_indices = @transform_2, window_bounds = array<i64: 2, 1024>}, {transform_indices = @transform_3, window_bounds = array<i64: 2, 1024>}]} {
    %c0 = arith.constant 0 : index
    %c0_0 = arith.constant 0 : index
    %0 = vector.load %arg3[%c0, %c0_0] : memref<2x1024xf32, #tpu.memory_space<vmem>>, vector<2x1024xf32>
    %c0_1 = arith.constant 0 : index
    %1 = memref.load %arg1[%c0_1] : memref<1xf32, #tpu.memory_space<smem>>
    %2 = vector.broadcast %1 : f32 to vector<2x1024xf32>
    %3 = arith.mulf %0, %2 : vector<2x1024xf32>
    %4 = math.roundeven %3 : vector<2x1024xf32>
    %cst = arith.constant -1.280000e+02 : f32
    %cst_2 = arith.constant 1.270000e+02 : f32
    %5 = vector.broadcast %cst : f32 to vector<2x1024xf32>
    %6 = arith.maximumf %5, %4 : vector<2x1024xf32>
    %7 = vector.broadcast %cst_2 : f32 to vector<2x1024xf32>
    %8 = arith.minimumf %7, %6 : vector<2x1024xf32>
    %9 = arith.fptosi %8 : vector<2x1024xf32> to vector<2x1024xi8>
    %c0_3 = arith.constant 0 : index
    %c0_4 = arith.constant 0 : index
    %10 = vector.load %arg4[%c0_3, %c0_4] : memref<2x1024xi8, #tpu.memory_space<vmem>>, vector<2x1024xi8>
    tpu.vector_store %arg4[%c0_3, %c0_4], %9 {strides = array<i32>} : memref<2x1024xi8, #tpu.memory_space<vmem>>, vector<2x1024xi8>,
    return
  }
  func.func @transform_0(%arg0: i32) -> i32 {
    %c0_i32 = arith.constant 0 : i32
    %c0_i32_0 = arith.constant 0 : i32
    return %c0_i32 : i32
  }
  func.func @transform_1(%arg0: i32) -> i32 {
    %c0_i32 = arith.constant 0 : i32
    %c0_i32_0 = arith.constant 0 : i32
    return %c0_i32 : i32
  }
  func.func @transform_2(%arg0: i32) -> (i32, i32) {
    %c0_i32 = arith.constant 0 : i32
    %c0_i32_0 = arith.constant 0 : i32
    return %arg0, %c0_i32 : i32, i32
  }
  func.func @transform_3(%arg0: i32) -> (i32, i32) {
    %c0_i32 = arith.constant 0 : i32
    %c0_i32_0 = arith.constant 0 : i32
    return %arg0, %c0_i32 : i32, i32
  }
}

</mosaic_0001>

<bundles_post_ra>
// kernel: tpu_custom_call.1
= control target key start
LH: loop header
LB: loop body
LE: loop exit
PB: predicated region body
PF: predicated region fallthrough
CT: control target
= control target key end

     0   :  { %10 = vsyncpa [#allocation5], 0  ;;  %s333_s0 = inlined_call_operand.<no memory space> [shape: f32[1], index: 0, kind: input, shape index: {}]   ;;  %s334_s1 = inlined_call_operand.<no memory space> [shape: s32[1], index: 1, kind: input, shape index: {}]   ;;  %s335_s2 = inlined_call_operand.hbm [shape: f32[2,1024], index: 2, kind: input, shape index: {}]   ;;  %s336_s3 = inlined_call_operand.hbm [shape: s8[2,1024], index: 3, kind: output, shape index: {}]  }
   0x1   :  { %11 = vsyncpa [#allocation6], 0  ;;  %s259_s12 = smov [#allocation4]  }
   0x2   :  { %s22_s13 = sshll.u32 %s259_s12, 4  ;;  %s23_s13 = int_to_ptr.vmem [resolvable:$true] %s22_s13 }
   0x3   :  { %s223_s14 = scalar_lea.vmem %s23_s13, 256  ;;  %p228_p1 = scmp.lt.s32.totalorder %s23_s13, %s23_s13 }
   0x4   :  { %p224_p0 = scmp.ne.s32.totalorder %s23_s13, %s223_s14  ;;  %p229_p2 = scmp.lt.s32.totalorder %s223_s14, %s223_s14 }
   0x6   :  { %p230_p3 = por %p229_p2, %p228_p1 }
   0x8   :  { %p231_p4 = pnand %p230_p3, %p224_p0 }
   0xa   :  { %234 = shalt.err (!%p231_p4)
}
   0xb   :  { %25 = dma.hbm_to_vmem [thread:$0]  %s335_s2, 256, %s23_s13, [#allocation5]  }
   0xc   :  { %255 = dma.done.wait [#allocation5], 256  }
   0xd   :  { %256 = vsyncadd [#allocation5], 4294967040  ;;  %vm146_vm0 = vcmask 1040384   ;;  %vm147_vm1 = vsmask.f32 256  ;;  %v51_v2 = vlaneseq  ;;  %vm149_vm3 = vcmask 1041409  }
   0xe   :  { %v260_v0 = vmov 1983009808   ;;  %vm286_vm2 = vmand %vm146_vm0, %vm147_vm1  ;;  %vm150_vm4 = vsmask.f32 1280  ;;  %vm153_vm6 = vcmask 1042434   ;;  %v32_v5 = vstv %s333_s0  ;;  %v29_v8 = vld [vmem:[#allocation4] sm:$0xff] }
   0xf   :  { %v49_v1 = vunpack.c.l.s4 %v260_v0  ;;  %vm290_vm5 = vmand %vm149_vm3, %vm150_vm4  ;;  %vm154_vm7 = vsmask.f32 2304  ;;  %v52_v7 = vshrl.u32 %v51_v2, 7  ;;  %v30_v9 = vld [vmem:[#allocation4 + $0x8] sm:$0xff]  ;;  %vm157_vm10 = vcmask 1043459   ;;  %s262_s0 = smov [#allocation7]  }
  0x10   :  { %vm152_vm8 = vmor %vm290_vm5, %vm286_vm2  ;;  %vm158_vm11 = vsmask.f32 3328  ;;  %v33_v10 = vmul.f32 %v32_v5, %v29_v8  ;;  %v34_v11 = vmul.f32 %v32_v5, %v30_v9  ;;  %v261_v12 = vmov 1966171168   ;;  %s186_s17 = sshll.u32 %s262_s0, 4  ;;  %v177_v55 = vld [vmem:[#allocation7] sm:$0xff]  ;;  %s187_s17 = int_to_ptr.vmem [resolvable:$true] %s186_s17 }
  0x11   :  { %v50_v6 = vunpack.c.0.s8 %v49_v1  ;;  %vm155_vm9 = vmand %vm153_vm6, %vm154_vm7  ;;  %v102_v13 = vunpack.c.l.s4 %v261_v12  ;;  %vm161_vm14 = vcmask 1044484   ;;  %vm162_vm15 = vsmask.f32 4352  ;;  %s235_s18 = scalar_lea.vmem %s187_s17, 128  ;;  %p240_p6 = scmp.lt.s32.totalorder %s187_s17, %s187_s17 }
  0x12   :  { %vm301_vm12 = vmor %vm155_vm9, %vm152_vm8  ;;  %v197_v15 = vclampa-f32 %v33_v10, -128, 127  ;;  %v199_v16 = vclampa-f32 %v34_v11, -128, 127  ;;  %vm165_vm2 = vcmask 1045509   ;;  %vm169_vm6 = vcmask 1046534   ;;  %p236_p5 = scmp.ne.s32.totalorder %s187_s17, %s235_s18  ;;  %p241_p7 = scmp.lt.s32.totalorder %s235_s18, %s235_s18 }
  0x13   :  { %v53_v17 = vsub.s32 %v50_v6, %v52_v7  ;;  %vm305_vm13 = vmand %vm157_vm10, %vm158_vm11  ;;  %v103_v21 = vunpack.c.0.s8 %v102_v13  ;;  %vm166_vm3 = vsmask.f32 5376  ;;  %vm170_vm7 = vsmask.f32 6400 }
  0x14   :  { %v207_v19 = vcvt.f32.s32 %v197_v15  ;;  %v210_v20 = vcvt.f32.s32 %v199_v16  ;;  %vm160_vm0 = vmor %vm305_vm13, %vm301_vm12  ;;  %vm173_vm10 = vcmask 1047559   ;;  %vm174_vm11 = vsmask.f32 7424  ;;  %p242_p8 = por %p241_p7, %p240_p6 }
  0x15   :  { %vm163_vm1 = vmand %vm161_vm14, %vm162_vm15  ;;  %v106_v32 = vsub.s32 %v103_v21, %v52_v7 }
  0x16   :  { %v47_v22 = vcombine.high %v207_v19, %v207_v19  ;;  %v54_v23 = vrot.slane %v207_v19, %v53_v17  ;;  %v64_v24 = vcombine.high %v210_v20, %v210_v20  ;;  %v71_v25 = vrot.slane %v210_v20, %v53_v17  ;;  %vm318_vm4 = vmor %vm163_vm1, %vm160_vm0  ;;  %p243_p9 = pnand %p242_p8, %p236_p5 }
  0x17   :  { %vm322_vm5 = vmand %vm165_vm2, %vm166_vm3 }
  0x18   :  { %v61_v26 = vrot.slane %v47_v22, %v53_v17  ;;  %v62_v27 = vcombine.high %v54_v23, %v54_v23  ;;  %v78_v28 = vrot.slane %v64_v24, %v53_v17  ;;  %v79_v29 = vcombine.high %v71_v25, %v71_v25  ;;  %vm168_vm8 = vmor %vm322_vm5, %vm318_vm4 }
  0x19   :  { %v81_v30 = vpack.c.b16 %v54_v23, %v54_v23  ;;  %v89_v31 = vpack.c.b16 %v71_v25, %v71_v25  ;;  %vm171_vm9 = vmand %vm169_vm6, %vm170_vm7 }
  0x1a   :  { %v63_v34 = vcombine.high %v61_v26, %v61_v26  ;;  %v80_v35 = vcombine.high %v78_v28, %v78_v28  ;;  %v83_v36 = vpack.c.b16 %v62_v27, %v62_v27  ;;  %v85_v37 = vpack.c.b16 %v61_v26, %v61_v26  ;;  %vm172_vm12 = vmor %vm171_vm9, %vm168_vm8 }
  0x1b   :  { %v91_v39 = vpack.c.b16 %v79_v29, %v79_v29  ;;  %v93_v40 = vpack.c.b16 %v78_v28, %v78_v28  ;;  %vm175_vm13 = vmand %vm173_vm10, %vm174_vm11 }
  0x1c   :  { %v87_v41 = vpack.c.b16 %v63_v34, %v63_v34  ;;  %v95_v42 = vpack.c.b16 %v80_v35, %v80_v35  ;;  %v201_v43 = vpack.c.b8 %v83_v36, %v81_v30  ;;  %vm176_vm14 = vmor %vm175_vm13, %vm172_vm12 }
  0x1d   :  { %v203_v44 = vpack.c.b8 %v91_v39, %v89_v31 }
  0x1e   :  { %v202_v45 = vpack.c.b8 %v87_v41, %v85_v37  ;;  %v204_v46 = vpack.c.b8 %v95_v42, %v93_v40  ;;  %v107_v47 = vrot.slane %v201_v43, %v106_v32 }
  0x1f   :  { %v121_v48 = vrot.slane %v203_v44, %v106_v32 }
  0x20   :  { %v114_v49 = vrot.slane %v202_v45, %v106_v32  ;;  %v128_v50 = vrot.slane %v204_v46, %v106_v32 }
  0x22   :  { %v129_v51 = vcombine.low %v107_v47, %v114_v49  ;;  %v130_v52 = vcombine.low %v121_v48, %v128_v50 }
  0x24   :  { %v137_v53 = vrot.slane %v129_v51, %v106_v32  ;;  %v144_v54 = vrot.slane %v130_v52, %v106_v32 }
  0x26   :  { %v145_v56 = vcombine.low %v137_v53, %v144_v54 }
  0x28   :  { %v178_v57 = vsel %vm176_vm14, %v145_v56, %v177_v55 }
  0x29   :  { %179 = vst [vmem:[#allocation7] sm:$0xff] %v178_v57 }
  0x2a   :  { %246 = shalt.err (!%p243_p9)
}
  0x2b   :  { %189 = dma.vmem_to_hbm [thread:$0]  %s187_s17, 128, %s336_s3, [#allocation6]  }
  0x2c   :  { %257 = dma.done.wait [#allocation6], 128  }
  0x2d   :  { %258 = vsyncadd [#allocation6], 4294967168 }
  0x2e   :  { %193 = vsyncpa [#allocation5], 1 }
  0x2f   :  { %194 = vsyncpa [#allocation6], 1 }

</bundles_post_ra>
